<compile_context>
chip_gen: v7x
topology: tpu7x:2x2x1
jax: 0.10.0
libtpu: 0.0.40
codegen_flags: <defaults>
</compile_context>

<pallas_src>
import functools

import jax
import jax.numpy as jnp
from jax.experimental import pallas as pl
from jax.experimental.pallas import tpu as pltpu

EPS = 1e-12                       # BERT LayerNorm eps
TM, TN, TK = 512, 512, 1024       # preferred (production) MXU-aligned tiles


def _default_vmem_limit():
    """Generation-aware scoped-VMEM limit: ~3/4 of physical, capped at 96 MiB."""
    cap = 64 * 1024 * 1024
    try:
        cap = int(pltpu.get_tpu_info().vmem_capacity_bytes)
    except Exception:
        pass  # conservative fallback (safe on v5e/v6e/v7x)
    return int(max(32 * 1024 * 1024, min(96 * 1024 * 1024, (cap * 3) // 4)))


VMEM_LIMIT = _default_vmem_limit()


def _round_up(x, m):
    return -(-x // m) * m


def _tile_pad(dim, preferred):
    """Return (tile, padded_dim).

    Small dims use the full dim as the block (always legal).  Large dims are
    padded up to a 128-multiple and tiled with the largest 128-multiple tile
    <= preferred that divides the padded dim (never a sub-128 lane tile)."""
    if dim <= preferred:
        return dim, dim
    pdim = _round_up(dim, 128)
    t = preferred
    while pdim % t:
        t -= 128
    return t, pdim


def _vmem_spec():
    return pl.BlockSpec(memory_space=pltpu.MemorySpace.VMEM)


# ----------------------------- Pallas kernels ------------------------------ #

def dense_kernel(x_ref, w_ref, b_ref, o_ref, acc_ref, *, act, nk):
    """Tiled bf16 matmul with f32 K-accumulation; bias (+gelu) f32 epilogue."""
    @pl.when(pl.program_id(2) == 0)
    def _():
        acc_ref[...] = jnp.zeros_like(acc_ref)

    acc_ref[...] += jnp.dot(x_ref[...], w_ref[...],
                            preferred_element_type=jnp.float32)

    @pl.when(pl.program_id(2) == nk - 1)
    def _():
        y = acc_ref[...] + b_ref[...]
        if act == "gelu":
            # exact (erf) GELU as in BERT; tanh GELU would use the idle EUP slot.
            y = jax.nn.gelu(y, approximate=False)
        o_ref[...] = y.astype(o_ref.dtype)


def dense_add_ln_kernel(x_ref, w_ref, b_ref, r_ref, g_ref, beta_ref,
                        o_ref, acc_ref, *, nk):
    """Tiled bf16 matmul fused with bias + residual add + LayerNorm (f32) epilogue."""
    @pl.when(pl.program_id(1) == 0)
    def _():
        acc_ref[...] = jnp.zeros_like(acc_ref)

    acc_ref[...] += jnp.dot(x_ref[...], w_ref[...],
                            preferred_element_type=jnp.float32)

    @pl.when(pl.program_id(1) == nk - 1)
    def _():
        y = acc_ref[...] + b_ref[...] + r_ref[...].astype(jnp.float32)
        mu = jnp.mean(y, axis=-1, keepdims=True)
        var = jnp.mean((y - mu) ** 2, axis=-1, keepdims=True)
        y = (y - mu) * jax.lax.rsqrt(var + EPS)
        o_ref[...] = (y * g_ref[...] + beta_ref[...]).astype(o_ref.dtype)


def embed_ln_kernel(e_ref, c_ref, g_ref, b_ref, o_ref):
    """Fused BERT embedding LayerNorm + ctx add + second LayerNorm (shared g/b)."""
    g = g_ref[...]
    b = b_ref[...]

    def ln(v):
        mu = jnp.mean(v, axis=-1, keepdims=True)
        var = jnp.mean((v - mu) ** 2, axis=-1, keepdims=True)
        return (v - mu) * jax.lax.rsqrt(var + EPS) * g + b

    y = ln(ln(e_ref[...].astype(jnp.float32)) + c_ref[...].astype(jnp.float32))
    o_ref[...] = y.astype(o_ref.dtype)


def attention_kernel(q_ref, kv_ref, m_ref, o_ref, *, num_heads, head_dim, scale):
    """All heads for one (batch, query-tile).

    q_ref:  (1, tq, 3H) fused-QKV rows of this query tile (only Q lanes used)
    kv_ref: (1,  S, 3H) fused-QKV for the full sequence (K/V lanes used)
    m_ref:  (1,  1,  S) raw 0/1 mask, ADDED to the scores (as in the module)
    """
    H = num_heads * head_dim
    q3 = q_ref[0]                                   # (tq, 3H) bf16
    kv = kv_ref[0]                                  # (S,  3H) bf16
    tq, S = q3.shape[0], kv.shape[0]

    qh = q3[:, :H].reshape(tq, num_heads, head_dim)
    kh = kv[:, H:2 * H].reshape(S, num_heads, head_dim)
    vh = kv[:, 2 * H:].reshape(S, num_heads, head_dim)

    # bf16 operands straight into the MXU, f32 accumulation: (heads, tq, S).
    s = jnp.einsum("qhd,khd->hqk", qh, kh,
                   preferred_element_type=jnp.float32) * scale
    s = s + m_ref[0].astype(jnp.float32)            # (1, S) -> (heads, tq, S)
    s = s - jnp.max(s, axis=-1, keepdims=True)
    p = jnp.exp(s)
    p = p * pl.reciprocal(jnp.sum(p, axis=-1, keepdims=True), approx=True)

    ctx = jnp.einsum("hqk,khd->qhd", p.astype(vh.dtype), vh,
                     preferred_element_type=jnp.float32)   # (tq, heads, d)
    o_ref[0] = ctx.reshape(tq, H).astype(o_ref.dtype)
    # TODO(synk): kv-block online softmax (flash-style) for very long S; the
    #             full (heads, tq, S) score tile is materialized per query tile.


def head_kernel(cls_ref, wff_ref, bff_ref, wv_ref, o_ref):
    h = jnp.tanh(jnp.dot(cls_ref[...].astype(jnp.float32), wff_ref[...],
                         preferred_element_type=jnp.float32) + bff_ref[...])
    o_ref[...] = jnp.dot(h, wv_ref[...],
                         preferred_element_type=jnp.float32).astype(o_ref.dtype)


# ------------------------------ kernel wrappers ----------------------------- #

def dense(x, w, b, act="none"):
    M, K = x.shape
    N = w.shape[1]
    x = x.astype(jnp.bfloat16)
    w = w.astype(jnp.bfloat16)
    b = b.astype(jnp.float32)
    tm, Mp = _tile_pad(M, TM)
    tn, Np = _tile_pad(N, TN)
    tk, Kp = _tile_pad(K, TK)
    if (Mp, Kp) != (M, K):
        x = jnp.pad(x, ((0, Mp - M), (0, Kp - K)))
    if (Kp, Np) != (K, N):
        w = jnp.pad(w, ((0, Kp - K), (0, Np - N)))
    if Np != N:
        b = jnp.pad(b, ((0, 0), (0, Np - N)))
    grid = (Mp // tm, Np // tn, Kp // tk)
    cost = pl.CostEstimate(
        flops=2 * Mp * Np * Kp,
        transcendentals=(Mp * Np if act == "gelu" else 0),
        bytes_accessed=2 * (Mp * Kp + Kp * Np + Mp * Np) + 4 * Np)
    out = pl.pallas_call(
        functools.partial(dense_kernel, act=act, nk=grid[2]),
        out_shape=jax.ShapeDtypeStruct((Mp, Np), jnp.bfloat16),
        grid_spec=pltpu.PrefetchScalarGridSpec(
            num_scalar_prefetch=0, grid=grid,
            in_specs=[pl.BlockSpec((tm, tk), lambda i, j, k: (i, k)),
                      pl.BlockSpec((tk, tn), lambda i, j, k: (k, j)),
                      pl.BlockSpec((1, tn), lambda i, j, k: (0, j))],
            out_specs=pl.BlockSpec((tm, tn), lambda i, j, k: (i, j)),
            scratch_shapes=[pltpu.VMEM((tm, tn), jnp.float32)]),
        compiler_params=pltpu.CompilerParams(
            dimension_semantics=("parallel", "parallel", "arbitrary"),
            vmem_limit_bytes=VMEM_LIMIT),
        cost_estimate=cost,
    )(x, w, b)
    return out[:M, :N] if (Mp, Np) != (M, N) else out


def dense_add_ln(x, w, b, residual, gamma, beta):
    M, K = x.shape
    N = w.shape[1]            # LayerNorm runs over the full N axis -> never pad N
    x = x.astype(jnp.bfloat16)
    w = w.astype(jnp.bfloat16)
    residual = residual.astype(jnp.bfloat16)
    b, gamma, beta = (t.astype(jnp.float32) for t in (b, gamma, beta))
    tm, Mp = _tile_pad(M, TM)
    tk, Kp = _tile_pad(K, TK)
    if (Mp, Kp) != (M, K):
        x = jnp.pad(x, ((0, Mp - M), (0, Kp - K)))
    if Kp != K:
        w = jnp.pad(w, ((0, Kp - K), (0, 0)))
    if Mp != M:
        residual = jnp.pad(residual, ((0, Mp - M), (0, 0)))
    grid = (Mp // tm, Kp // tk)
    cost = pl.CostEstimate(
        flops=2 * Mp * N * Kp + 10 * Mp * N,
        transcendentals=Mp,
        bytes_accessed=2 * (Mp * Kp + Kp * N + 2 * Mp * N) + 12 * N)
    out = pl.pallas_call(
        functools.partial(dense_add_ln_kernel, nk=grid[1]),
        out_shape=jax.ShapeDtypeStruct((Mp, N), jnp.bfloat16),
        grid_spec=pltpu.PrefetchScalarGridSpec(
            num_scalar_prefetch=0, grid=grid,
            in_specs=[pl.BlockSpec((tm, tk), lambda i, k: (i, k)),
                      pl.BlockSpec((tk, N), lambda i, k: (k, 0)),
                      pl.BlockSpec((1, N), lambda i, k: (0, 0)),
                      pl.BlockSpec((tm, N), lambda i, k: (i, 0)),
                      pl.BlockSpec((1, N), lambda i, k: (0, 0)),
                      pl.BlockSpec((1, N), lambda i, k: (0, 0))],
            out_specs=pl.BlockSpec((tm, N), lambda i, k: (i, 0)),
            scratch_shapes=[pltpu.VMEM((tm, N), jnp.float32)]),
        compiler_params=pltpu.CompilerParams(
            dimension_semantics=("parallel", "arbitrary"),
            vmem_limit_bytes=VMEM_LIMIT),
        cost_estimate=cost,
    )(x, w, b, residual, gamma, beta)
    return out[:M] if Mp != M else out


def embed_layernorm(e2d, ctx2d, gamma, beta):
    M, H = e2d.shape
    e2d = e2d.astype(jnp.bfloat16)
    ctx2d = ctx2d.astype(jnp.bfloat16)
    gamma = gamma.astype(jnp.float32)
    beta = beta.astype(jnp.float32)
    tm, Mp = _tile_pad(M, 2048)          # memory-bound: big row tiles
    if Mp != M:
        e2d = jnp.pad(e2d, ((0, Mp - M), (0, 0)))
        ctx2d = jnp.pad(ctx2d, ((0, Mp - M), (0, 0)))
    out = pl.pallas_call(
        embed_ln_kernel,
        out_shape=jax.ShapeDtypeStruct((Mp, H), jnp.bfloat16),
        grid=(Mp // tm,),
        in_specs=[pl.BlockSpec((tm, H), lambda i: (i, 0)),
                  pl.BlockSpec((tm, H), lambda i: (i, 0)),
                  pl.BlockSpec((1, H), lambda i: (0, 0)),
                  pl.BlockSpec((1, H), lambda i: (0, 0))],
        out_specs=pl.BlockSpec((tm, H), lambda i: (i, 0)),
        compiler_params=pltpu.CompilerParams(
            dimension_semantics=("parallel",),
            vmem_limit_bytes=VMEM_LIMIT),
    )(e2d, ctx2d, gamma, beta)
    return out[:M] if Mp != M else out


def _pick_q_tile(S):
    if S <= 256:
        return S
    for t in (256, 128):
        if S % t == 0:
            return t
    return S   # TODO(synk): pad ragged sequence lengths instead of full-S tiles


def multi_head_attention(qkv, attn_mask, num_heads):
    B, S, H3 = qkv.shape
    H = H3 // 3
    dh = H // num_heads
    qkv = qkv.astype(jnp.bfloat16)
    m = attn_mask.reshape(B, 1, S).astype(jnp.float32)   # no head broadcast in HBM
    tq = _pick_q_tile(S)
    grid = (B, S // tq)
    cost = pl.CostEstimate(
        flops=4 * B * S * S * H,
        transcendentals=B * num_heads * S * S,
        bytes_accessed=2 * (2 * B * S * H3 + B * S * H) + 4 * B * S)
    return pl.pallas_call(
        functools.partial(attention_kernel, num_heads=num_heads,
                          head_dim=dh, scale=1.0 / (dh ** 0.5)),
        out_shape=jax.ShapeDtypeStruct((B, S, H), jnp.bfloat16),
        grid=grid,
        in_specs=[pl.BlockSpec((1, tq, H3), lambda b, qi: (b, qi, 0)),
                  pl.BlockSpec((1, S, H3), lambda b, qi: (b, 0, 0)),
                  pl.BlockSpec((1, 1, S), lambda b, qi: (b, 0, 0))],
        out_specs=pl.BlockSpec((1, tq, H), lambda b, qi: (b, qi, 0)),
        compiler_params=pltpu.CompilerParams(
            dimension_semantics=("parallel", "parallel"),
            vmem_limit_bytes=VMEM_LIMIT),
        cost_estimate=cost,
    )(qkv, qkv, m)


def req_slot_logits(cls, wff, bff, wv):
    B = cls.shape[0]
    out = pl.pallas_call(
        head_kernel,
        out_shape=jax.ShapeDtypeStruct((B, 1), jnp.float32),
        in_specs=[_vmem_spec()] * 4,
        out_specs=_vmem_spec(),
    )(cls, wff, bff, wv)
    return out[:, 0]   # .squeeze(-1)


# ------------------------------- model (glue) ------------------------------- #

def init_params(key, *, vocab, max_pos, type_vocab, ctx_dim, hidden,
                num_layers, intermediate):
    keys = iter(jax.random.split(key, 128))
    wf = lambda shape: (jax.random.normal(next(keys), shape, jnp.float32) * 0.02)
    wb = lambda shape: wf(shape).astype(jnp.bfloat16)   # MXU weights stored bf16
    ones = lambda n: jnp.ones((1, n), jnp.float32)
    zeros = lambda n: jnp.zeros((1, n), jnp.float32)

    params = {
        "word_emb": wf((vocab, hidden)),
        "pos_emb": wf((max_pos, hidden)),
        "type_emb": wf((type_vocab, hidden)),
        "ctx_emb": wf((ctx_dim, hidden)),
        "emb_ln_g": ones(hidden), "emb_ln_b": zeros(hidden),
        "head_wff": wf((hidden, hidden)), "head_bff": zeros(hidden),
        "head_wv": wf((hidden, 1)),
        "layers": [],
    }
    for _ in range(num_layers):
        params["layers"].append({
            # fused Q|K|V projection
            "wqkv": wb((hidden, 3 * hidden)), "bqkv": zeros(3 * hidden),
            "wo": wb((hidden, hidden)), "bo": zeros(hidden),
            "ln1_g": ones(hidden), "ln1_b": zeros(hidden),
            "wi": wb((hidden, intermediate)), "bi": zeros(intermediate),
            "wo2": wb((intermediate, hidden)), "bo2": zeros(hidden),
            "ln2_g": ones(hidden), "ln2_b": zeros(hidden),
        })
    return params


def encoder_layer(x, attn_mask, lp, num_heads):
    B, S, H = x.shape
    x2 = x.reshape(B * S, H)
    # fused QKV projection: one bf16 matmul, activation read from HBM once
    qkv = dense(x2, lp["wqkv"], lp["bqkv"])                       # (BS, 3H)
    ctx = multi_head_attention(qkv.reshape(B, S, 3 * H), attn_mask, num_heads)
    # attention output projection fused with residual add + LayerNorm
    x2 = dense_add_ln(ctx.reshape(B * S, H), lp["wo"], lp["bo"],
                      x2, lp["ln1_g"], lp["ln1_b"])
    # FFN: GELU fused into first matmul; residual + LayerNorm fused into second
    inter = dense(x2, lp["wi"], lp["bi"], act="gelu")
    x2 = dense_add_ln(inter, lp["wo2"], lp["bo2"],
                      x2, lp["ln2_g"], lp["ln2_b"])
    return x2.reshape(B, S, H)


def req_slot_head_forward(params, input_ids, token_type_ids, context_ids,
                          attention_mask, *, num_heads):
    B, S = input_ids.shape
    H = params["word_emb"].shape[1]

    # bert.embeddings gathers stay in JAX glue (data-dependent row gather).
    pos_ids = jnp.arange(S)
    emb_sum = (params["word_emb"][input_ids]
               + params["pos_emb"][pos_ids][None, :, :]
               + params["type_emb"][token_type_ids])
    ctx = params["ctx_emb"][context_ids]
    # LN(word+pos+type), + ctx_emb, LN again -- both LayerNorms fused in one
    # kernel with shared gamma/beta (dropout is identity in eval mode).
    hidden2d = embed_layernorm(emb_sum.reshape(B * S, H), ctx.reshape(B * S, H),
                               params["emb_ln_g"], params["emb_ln_b"])
    hidden = hidden2d.reshape(B, S, H)

    for lp in params["layers"]:
        hidden = encoder_layer(hidden, attention_mask, lp, num_heads)

    # [CLS] -> tanh(W r) -> v^T  (sigmoid folded into BCE-with-logits; loss path
    # skipped since labels=None)
    cls = hidden[:, 0, :]
    return req_slot_logits(cls, params["head_wff"], params["head_bff"],
                           params["head_wv"])


# ----------------------------------- main ----------------------------------- #

if __name__ == "__main__":
    B, S, H = 2, 8, 32
    NUM_HEADS, INTERMEDIATE, NUM_LAYERS = 2, 64, 2
    VOCAB, MAX_POS, TYPE_VOCAB, CTX_DIM = 100, 32, 2, 5

    root = jax.random.PRNGKey(0)
    kp, k1, k2, k3 = jax.random.split(root, 4)

    params = init_params(kp, vocab=VOCAB, max_pos=MAX_POS,
                         type_vocab=TYPE_VOCAB, ctx_dim=CTX_DIM, hidden=H,
                         num_layers=NUM_LAYERS, intermediate=INTERMEDIATE)

    input_ids = jax.random.randint(k1, (B, S), 0, VOCAB, dtype=jnp.int32)
    token_type_ids = jnp.zeros((B, S), jnp.int32)
    context_ids = jax.random.randint(k2, (B, S), 0, CTX_DIM, dtype=jnp.int32)
    attention_mask = jnp.concatenate(
        [jnp.ones((B, S - 2), jnp.float32), jnp.zeros((B, 2), jnp.float32)],
        axis=-1)

    logits = req_slot_head_forward(params, input_ids, token_type_ids,
                                   context_ids, attention_mask,
                                   num_heads=NUM_HEADS)
    jax.block_until_ready(logits)
    assert logits.shape == (B,)
    assert logits.dtype == jnp.float32
    print("KERNEL_OK")
</pallas_src>

<mosaic_0001>
module attributes {stable_mosaic.version = 11 : i64} {
  func.func @embed_ln_kernel(%arg0: i32, %arg1: memref<16x32xbf16, #tpu.memory_space<vmem>>, %arg2: memref<16x32xbf16, #tpu.memory_space<vmem>>, %arg3: memref<1x32xf32, #tpu.memory_space<vmem>>, %arg4: memref<1x32xf32, #tpu.memory_space<vmem>>, %arg5: memref<16x32xbf16, #tpu.memory_space<vmem>>) attributes {dimension_semantics = [#tpu.dimension_semantics<parallel>], iteration_bounds = array<i64: 1>, scalar_prefetch = 0 : i64, scratch_operands = 0 : i64, tpu.core_type = #tpu.core_type<tc>, window_params = [{transform_indices = @transform_0, window_bounds = array<i64: 16, 32>}, {transform_indices = @transform_1, window_bounds = array<i64: 16, 32>}, {pipeline_mode = #tpu.pipeline_mode<synchronous>, transform_indices = @transform_2, window_bounds = array<i64: 1, 32>}, {pipeline_mode = #tpu.pipeline_mode<synchronous>, transform_indices = @transform_3, window_bounds = array<i64: 1, 32>}, {transform_indices = @transform_4, window_bounds = array<i64: 16, 32>}]} {
    %c0 = arith.constant 0 : index
    %c0_0 = arith.constant 0 : index
    %0 = vector.load %arg3[%c0, %c0_0] : memref<1x32xf32, #tpu.memory_space<vmem>>, vector<1x32xf32>
    %c0_1 = arith.constant 0 : index
    %c0_2 = arith.constant 0 : index
    %1 = vector.load %arg4[%c0_1, %c0_2] : memref<1x32xf32, #tpu.memory_space<vmem>>, vector<1x32xf32>
    %c0_3 = arith.constant 0 : index
    %c0_4 = arith.constant 0 : index
    %2 = vector.load %arg1[%c0_3, %c0_4] : memref<16x32xbf16, #tpu.memory_space<vmem>>, vector<16x32xbf16>
    %3 = arith.extf %2 : vector<16x32xbf16> to vector<16x32xf32>
    %cst = arith.constant dense<0.000000e+00> : vector<16xf32>
    %4 = vector.multi_reduction <add>, %3, %cst [1] : vector<16x32xf32> to vector<16xf32>
    %5 = vector.shape_cast %4 : vector<16xf32> to vector<16x1xf32>
    %cst_5 = arith.constant 3.200000e+01 : f32
    %6 = vector.broadcast %cst_5 : f32 to vector<16x1xf32>
    %7 = arith.divf %5, %6 : vector<16x1xf32>
    %8 = vector.broadcast %7 : vector<16x1xf32> to vector<16x32xf32>
    %9 = arith.subf %3, %8 : vector<16x32xf32>
    %10 = arith.mulf %9, %9 : vector<16x32xf32>
    %cst_6 = arith.constant dense<0.000000e+00> : vector<16xf32>
    %11 = vector.multi_reduction <add>, %10, %cst_6 [1] : vector<16x32xf32> to vector<16xf32>
    %12 = vector.shape_cast %11 : vector<16xf32> to vector<16x1xf32>
    %cst_7 = arith.constant 3.200000e+01 : f32
    %13 = vector.broadcast %cst_7 : f32 to vector<16x1xf32>
    %14 = arith.divf %12, %13 : vector<16x1xf32>
    %15 = vector.broadcast %7 : vector<16x1xf32> to vector<16x32xf32>
    %16 = arith.subf %3, %15 : vector<16x32xf32>
    %cst_8 = arith.constant 9.99999996E-13 : f32
    %17 = vector.broadcast %cst_8 : f32 to vector<16x1xf32>
    %18 = arith.addf %14, %17 : vector<16x1xf32>
    %19 = math.rsqrt %18 : vector<16x1xf32>
    %20 = vector.broadcast %19 : vector<16x1xf32> to vector<16x32xf32>
    %21 = arith.mulf %16, %20 : vector<16x32xf32>
    %22 = vector.broadcast %0 : vector<1x32xf32> to vector<16x32xf32>
    %23 = arith.mulf %21, %22 : vector<16x32xf32>
    %24 = vector.broadcast %1 : vector<1x32xf32> to vector<16x32xf32>
    %25 = arith.addf %23, %24 : vector<16x32xf32>
    %c0_9 = arith.constant 0 : index
    %c0_10 = arith.constant 0 : index
    %26 = vector.load %arg2[%c0_9, %c0_10] : memref<16x32xbf16, #tpu.memory_space<vmem>>, vector<16x32xbf16>
    %27 = arith.extf %26 : vector<16x32xbf16> to vector<16x32xf32>
    %28 = arith.addf %25, %27 : vector<16x32xf32>
    %cst_11 = arith.constant dense<0.000000e+00> : vector<16xf32>
    %29 = vector.multi_reduction <add>, %28, %cst_11 [1] : vector<16x32xf32> to vector<16xf32>
    %30 = vector.shape_cast %29 : vector<16xf32> to vector<16x1xf32>
    %cst_12 = arith.constant 3.200000e+01 : f32
    %31 = vector.broadcast %cst_12 : f32 to vector<16x1xf32>
    %32 = arith.divf %30, %31 : vector<16x1xf32>
    %33 = vector.broadcast %32 : vector<16x1xf32> to vector<16x32xf32>
    %34 = arith.subf %28, %33 : vector<16x32xf32>
    %35 = arith.mulf %34, %34 : vector<16x32xf32>
    %cst_13 = arith.constant dense<0.000000e+00> : vector<16xf32>
    %36 = vector.multi_reduction <add>, %35, %cst_13 [1] : vector<16x32xf32> to vector<16xf32>
    %37 = vector.shape_cast %36 : vector<16xf32> to vector<16x1xf32>
    %cst_14 = arith.constant 3.200000e+01 : f32
    %38 = vector.broadcast %cst_14 : f32 to vector<16x1xf32>
    %39 = arith.divf %37, %38 : vector<16x1xf32>
    %40 = vector.broadcast %32 : vector<16x1xf32> to vector<16x32xf32>
    %41 = arith.subf %28, %40 : vector<16x32xf32>
    %cst_15 = arith.constant 9.99999996E-13 : f32
    %42 = vector.broadcast %cst_15 : f32 to vector<16x1xf32>
    %43 = arith.addf %39, %42 : vector<16x1xf32>
    %44 = math.rsqrt %43 : vector<16x1xf32>
    %45 = vector.broadcast %44 : vector<16x1xf32> to vector<16x32xf32>
    %46 = arith.mulf %41, %45 : vector<16x32xf32>
    %47 = vector.broadcast %0 : vector<1x32xf32> to vector<16x32xf32>
    %48 = arith.mulf %46, %47 : vector<16x32xf32>
    %49 = vector.broadcast %1 : vector<1x32xf32> to vector<16x32xf32>
    %50 = arith.addf %48, %49 : vector<16x32xf32>
    %51 = arith.truncf %50 : vector<16x32xf32> to vector<16x32xbf16>
    %c0_16 = arith.constant 0 : index
    %c0_17 = arith.constant 0 : index
    %52 = vector.load %arg5[%c0_16, %c0_17] : memref<16x32xbf16, #tpu.memory_space<vmem>>, vector<16x32xbf16>
    tpu.vector_store %arg5[%c0_16, %c0_17], %51 {strides = array<i32>} : memref<16x32xbf16, #tpu.memory_space<vmem>>, vector<16x32xbf16>,
    return
  }
  func.func @transform_0(%arg0: i32) -> (i32, i32) {
    %c0_i32 = arith.constant 0 : i32
    %c0_i32_0 = arith.constant 0 : i32
    return %arg0, %c0_i32 : i32, i32
  }
  func.func @transform_1(%arg0: i32) -> (i32, i32) {
    %c0_i32 = arith.constant 0 : i32
    %c0_i32_0 = arith.constant 0 : i32
    return %arg0, %c0_i32 : i32, i32
  }
  func.func @transform_2(%arg0: i32) -> (i32, i32) {
    %c0_i32 = arith.constant 0 : i32
    %c0_i32_0 = arith.constant 0 : i32
    %c0_i32_1 = arith.constant 0 : i32
    return %c0_i32, %c0_i32_0 : i32, i32
  }
  func.func @transform_3(%arg0: i32) -> (i32, i32) {
    %c0_i32 = arith.constant 0 : i32
    %c0_i32_0 = arith.constant 0 : i32
    %c0_i32_1 = arith.constant 0 : i32
    return %c0_i32, %c0_i32_0 : i32, i32
  }
  func.func @transform_4(%arg0: i32) -> (i32, i32) {
    %c0_i32 = arith.constant 0 : i32
    %c0_i32_0 = arith.constant 0 : i32
    return %arg0, %c0_i32 : i32, i32
  }
}

</mosaic_0001>

<bundles_post_ra>
// kernel: tpu_custom_call.1
= control target key start
LH: loop header
LB: loop body
LE: loop exit
PB: predicated region body
PF: predicated region fallthrough
CT: control target
= control target key end

     0   :  { %9 = vsyncpa [#allocation3], 0  ;;  %s349_s0 = inlined_call_operand.hbm [shape: bf16[16,32], index: 0, kind: input, shape index: {}]   ;;  %s350_s1 = inlined_call_operand.hbm [shape: bf16[16,32], index: 1, kind: input, shape index: {}]   ;;  %s351_s2 = inlined_call_operand.vmem [shape: f32[1,32], index: 2, kind: input, shape index: {}]   ;;  %s352_s3 = inlined_call_operand.vmem [shape: f32[1,32], index: 3, kind: input, shape index: {}]   ;;  %s353_s4 = inlined_call_operand.hbm [shape: bf16[16,32], index: 4, kind: output, shape index: {}]  }
   0x1   :  { %10 = vsyncpa [#allocation6], 0 }
   0x2   :  { %11 = vsyncpa [#allocation4], 0  ;;  %s260_s15 = smov [#allocation2]   ;;  %s188_s19 = scalar_lea.hbm %s349_s0, 128 }
   0x3   :  { %s17_s16 = sshll.u32 %s260_s15, 4  ;;  %p189_p0 = scmp.ne.s32.totalorder %s349_s0, %s188_s19  ;;  %s18_s16 = int_to_ptr.vmem [resolvable:$true] %s17_s16 }
   0x4   :  { %p192_p1 = scmp.lt.u32.totalorder %s188_s19, %s349_s0 }
   0x6   :  { %p194_p2 = pnand %p192_p1, %p189_p0 }
   0x8   :  { %197 = shalt.err (!%p194_p2)
}
   0x9   :  { %s198_s24 = scalar_lea.vmem %s18_s16, 128  ;;  %p203_p4 = scmp.lt.s32.totalorder %s18_s16, %s18_s16 }
   0xa   :  { %p199_p3 = scmp.ne.s32.totalorder %s18_s16, %s198_s24  ;;  %p204_p5 = scmp.lt.s32.totalorder %s198_s24, %s198_s24 }
   0xc   :  { %p205_p6 = por %p204_p5, %p203_p4 }
   0xe   :  { %p206_p7 = pnand %p205_p6, %p199_p3 }
  0x10   :  { %209 = shalt.err (!%p206_p7)
}
  0x11   :  { %s261_s25 = smov 64   ;;  %s262_s26 = smov 4  }
  0x12   :  { %23 = dma.hbm_to_vmem [thread:$0]  %s349_s0, 128, %s18_s16, [#allocation3], %s261_s25, %s261_s25, %s262_s26  }
  0x13   :  { %s263_s29 = smov [#allocation5]   ;;  %s210_s7 = scalar_lea.hbm %s350_s1, 128 }
  0x14   :  { %s29_s30 = sshll.u32 %s263_s29, 4  ;;  %p211_p8 = scmp.ne.s32.totalorder %s350_s1, %s210_s7  ;;  %s30_s30 = int_to_ptr.vmem [resolvable:$true] %s29_s30 }
  0x15   :  { %p214_p9 = scmp.lt.u32.totalorder %s210_s7, %s350_s1 }
  0x17   :  { %p216_p10 = pnand %p214_p9, %p211_p8 }
  0x19   :  { %219 = shalt.err (!%p216_p10)
}
  0x1a   :  { %s220_s12 = scalar_lea.vmem %s30_s30, 128  ;;  %p225_p12 = scmp.lt.s32.totalorder %s30_s30, %s30_s30 }
  0x1b   :  { %p221_p11 = scmp.ne.s32.totalorder %s30_s30, %s220_s12  ;;  %p226_p13 = scmp.lt.s32.totalorder %s220_s12, %s220_s12 }
  0x1d   :  { %p227_p0 = por %p226_p13, %p225_p12 }
  0x1f   :  { %p228_p1 = pnand %p227_p0, %p221_p11 }
  0x21   :  { %231 = shalt.err (!%p228_p1)
}
  0x22   :  { %35 = dma.hbm_to_vmem [thread:$0]  %s350_s1, 128, %s30_s30, [#allocation6], %s261_s25, %s261_s25, %s262_s26  }
  0x23   :  { %254 = dma.done.wait [#allocation3], 128  }
  0x24   :  { %255 = vsyncadd [#allocation3], 4294967168 }
  0x25   :  { %256 = dma.done.wait [#allocation6], 128  }
  0x26   :  { %257 = vsyncadd [#allocation6], 4294967168  ;;  %v168_v0 = vld [vmem:[#allocation2] sm:$0xff]   ;;  %vm52_vm0 = vcmask 261120   ;;  %v172_v23 = vld [vmem:[#allocation5] sm:$0xff]   ;;  %vm140_vm1 = vcmask 257024  }
  0x27   :  { %v169_v1 = vunpack.c.l.bf16 %v168_v0  ;;  %v170_v2 = vunpack.c.h.bf16 %v168_v0  ;;  %v161_v22 = vld [vmem:[%s351_s2] ss:$0 sm:$0xff]  ;;  %v173_v27 = vunpack.c.l.bf16 %v172_v23  ;;  %v174_v33 = vunpack.c.h.bf16 %v172_v23  ;;  %s264_s2 = smov [#allocation7]  }
  0x28   :  { %v162_v25 = vld [vmem:[%s352_s3] ss:$0 sm:$0xff]  ;;  %s148_s3 = sshll.u32 %s264_s2, 4  ;;  %s149_s3 = int_to_ptr.vmem [resolvable:$true] %s148_s3 }
  0x29   :  { %v53_v3 = vsel %vm52_vm0, %v169_v1, 0.0  ;;  %v56_v4 = vsel %vm52_vm0, %v170_v2, 0.0  ;;  %s232_s17 = scalar_lea.vmem %s149_s3, 128  ;;  %p237_p3 = scmp.lt.s32.totalorder %s149_s3, %s149_s3 }
  0x2a   :  { %54 = vadd.xlane.f32.xlu0 %v53_v3  ;;  %p233_p2 = scmp.ne.s32.totalorder %s149_s3, %s232_s17  ;;  %p238_p4 = scmp.lt.s32.totalorder %s232_s17, %s232_s17 }
  0x2c   :  { %p239_p5 = por %p238_p4, %p237_p3 }
  0x2e   :  { %57 = vadd.xlane.f32.xlu0 %v56_v4  ;;  %p240_p6 = pnand %p239_p5, %p233_p2 }
  0xb7   :  { %v55_v5 = vpop.xlane.xlu0 %54 }
  0xb8   :  { %v60_v6 = vmul.f32 0.03125, %v55_v5 }
  0xba   :  { %v62_v7 = vsub.f32 %v169_v1, %v60_v6 }
  0xbb   :  { %v58_v8 = vpop.xlane.xlu0 %57 }
  0xbc   :  { %v61_v9 = vmul.f32 0.03125, %v58_v8  ;;  %v64_v10 = vmul.f32 %v62_v7, %v62_v7 }
  0xbe   :  { %v63_v11 = vsub.f32 %v170_v2, %v61_v9  ;;  %v66_v12 = vsel %vm52_vm0, %v64_v10, 0.0 }
  0xbf   :  { %67 = vadd.xlane.f32.xlu1 %v66_v12 }
  0xc0   :  { %v65_v13 = vmul.f32 %v63_v11, %v63_v11 }
  0xc2   :  { %v69_v14 = vsel %vm52_vm0, %v65_v13, 0.0 }
  0xc3   :  { %70 = vadd.xlane.f32.xlu1 %v69_v14 }
 0x14c   :  { %v68_v15 = vpop.xlane.xlu1 %67 }
 0x14d   :  { %v72_v16 = vmul.f32 0.03125, %v68_v15 }
 0x14f   :  { %v74_v17 = vadd.f32 1e-12, %v72_v16 }
 0x150   :  { %v71_v18 = vpop.xlane.xlu1 %70 }
 0x151   :  { %180 = vrsqrt.f32 %v74_v17  ;;  %v73_v19 = vmul.f32 0.03125, %v71_v18 }
 0x153   :  { %v75_v20 = vadd.f32 1e-12, %v73_v19 }
 0x155   :  { %182 = vrsqrt.f32 %v75_v20 }
 0x15b   :  { %v181_v21 = vpop.eup %180 }
 0x15c   :  { %v78_v24 = vmul.f32 %v181_v21, %v62_v7 }
 0x15e   :  { %v86_v26 = vmul.f32 %v161_v22, %v78_v24 }
 0x15f   :  { %v183_v28 = vpop.eup %182 }
 0x160   :  { %v94_v29 = vadd.f32 %v162_v25, %v86_v26  ;;  %v79_v30 = vmul.f32 %v183_v28, %v63_v11 }
 0x162   :  { %v100_v31 = vadd.f32 %v173_v27, %v94_v29  ;;  %v87_v32 = vmul.f32 %v161_v22, %v79_v30 }
 0x164   :  { %v102_v34 = vsel %vm52_vm0, %v100_v31, 0.0  ;;  %v95_v35 = vadd.f32 %v162_v25, %v87_v32 }
 0x165   :  { %103 = vadd.xlane.f32.xlu0 %v102_v34 }
 0x166   :  { %v101_v36 = vadd.f32 %v174_v33, %v95_v35 }
 0x168   :  { %v105_v37 = vsel %vm52_vm0, %v101_v36, 0.0 }
 0x169   :  { %106 = vadd.xlane.f32.xlu1 %v105_v37 }
 0x1f2   :  { %v104_v38 = vpop.xlane.xlu0 %103 }
 0x1f3   :  { %v108_v39 = vmul.f32 0.03125, %v104_v38 }
 0x1f5   :  { %v110_v40 = vsub.f32 %v100_v31, %v108_v39 }
 0x1f6   :  { %v107_v41 = vpop.xlane.xlu1 %106 }
 0x1f7   :  { %v109_v42 = vmul.f32 0.03125, %v107_v41  ;;  %v112_v43 = vmul.f32 %v110_v40, %v110_v40 }
 0x1f9   :  { %v111_v44 = vsub.f32 %v101_v36, %v109_v42  ;;  %v114_v45 = vsel %vm52_vm0, %v112_v43, 0.0 }
 0x1fa   :  { %115 = vadd.xlane.f32.xlu0 %v114_v45 }
 0x1fb   :  { %v113_v46 = vmul.f32 %v111_v44, %v111_v44 }
 0x1fd   :  { %v117_v47 = vsel %vm52_vm0, %v113_v46, 0.0 }
 0x1fe   :  { %118 = vadd.xlane.f32.xlu1 %v117_v47 }
 0x287   :  { %v116_v48 = vpop.xlane.xlu0 %115 }
 0x288   :  { %v120_v49 = vmul.f32 0.03125, %v116_v48 }
 0x28a   :  { %v122_v50 = vadd.f32 1e-12, %v120_v49 }
 0x28b   :  { %v119_v51 = vpop.xlane.xlu1 %118 }
 0x28c   :  { %184 = vrsqrt.f32 %v122_v50  ;;  %v121_v52 = vmul.f32 0.03125, %v119_v51 }
 0x28e   :  { %v123_v53 = vadd.f32 1e-12, %v121_v52 }
 0x290   :  { %186 = vrsqrt.f32 %v123_v53 }
 0x296   :  { %v185_v54 = vpop.eup %184 }
 0x297   :  { %v126_v55 = vmul.f32 %v185_v54, %v110_v40 }
 0x299   :  { %v128_v56 = vmul.f32 %v161_v22, %v126_v55 }
 0x29a   :  { %v187_v57 = vpop.eup %186 }
 0x29b   :  { %v127_v58 = vmul.f32 %v187_v57, %v111_v44  ;;  %v130_v59 = vadd.f32 %v162_v25, %v128_v56 }
 0x29d   :  { %v129_v60 = vmul.f32 %v161_v22, %v127_v58  ;;  %v165_v61 = vpack.c.bf16 %v130_v59, %v130_v59 }
 0x29f   :  { %v131_v62 = vadd.f32 %v162_v25, %v129_v60  ;;  %141 = vst.msk [vmem:[#allocation7] sm:$0xf] %vm140_vm1, %v165_v61 }
 0x2a1   :  { %v166_v63 = vpack.c.bf16 %v131_v62, %v131_v62 }
 0x2a3   :  { %142 = vst.msk [vmem:[#allocation7 + $0x4] sm:$0xf] %vm140_vm1, %v166_v63 }
 0x2a4   :  { %243 = shalt.err (!%p240_p6)
}
 0x2a5   :  { %s244_s20 = scalar_lea.hbm %s353_s4, 128 }
 0x2a6   :  { %p245_p7 = scmp.ne.s32.totalorder %s353_s4, %s244_s20  ;;  %p248_p8 = scmp.lt.u32.totalorder %s244_s20, %s353_s4 }
 0x2a8   :  { %p250_p9 = pnand %p248_p8, %p245_p7 }
 0x2aa   :  { %253 = shalt.err (!%p250_p9)
}
 0x2ab   :  { %154 = dma.vmem_to_hbm [thread:$0]  %s149_s3, 128, %s353_s4, [#allocation4], %s261_s25, %s261_s25, %s262_s26  }
 0x2ac   :  { %258 = dma.done.wait [#allocation4], 128  }
 0x2ad   :  { %259 = vsyncadd [#allocation4], 4294967168 }
 0x2ae   :  { %158 = vsyncpa [#allocation3], 1 }
 0x2af   :  { %159 = vsyncpa [#allocation6], 1 }
 0x2b0   :  { %160 = vsyncpa [#allocation4], 1 }

</bundles_post_ra>
